<compile_context>
chip_gen: v7x
topology: tpu7x:2x2x1
jax: 0.10.0
libtpu: 0.0.40
codegen_flags: <defaults>
</compile_context>

<pallas_src>
import jax
import jax.numpy as jnp
from jax.experimental import pallas as pl
from jax.experimental.pallas import tpu as pltpu


def _round_up(x, m):
    return (x + m - 1) // m * m


def _pick_tiling(n):
    """Row/K tile sizes and padded node count (n_pad divisible by both)."""
    if n <= 128:
        tm = tk = 128
    elif n <= 256:
        tm = tk = 256
    elif n <= 4096:
        tm = tk = 512
    else:
        tm, tk = 1024, 512          # decoupled at scale; A tile = 512 KiB int8
    n_pad = _round_up(n, max(tm, tk))
    return n_pad, tm, tk


def build_graph(edge_index, num_nodes):
    """Dense A_hat (unnormalized, exact small-int counts) and d^{-1/2}."""
    src, dst = edge_index[0], edge_index[1]
    # duplicate (src, dst) edges sum, matching PyG message accumulation
    adj = jnp.zeros((num_nodes, num_nodes), jnp.float32).at[dst, src].add(1.0)
    # add_remaining_self_loops: keep existing self-loops, add 1.0 where absent
    diag = jnp.diagonal(adj)
    adj = adj + jnp.diag(jnp.where(diag > 0.0, 0.0, 1.0))
    deg = adj.sum(axis=1)                                    # in-degree (+loop)
    d_inv_sqrt = jnp.where(deg > 0.0, 1.0 / jnp.sqrt(deg), 0.0)
    # NOTE: int8 storage of A_hat is exact for up to 127 parallel edges per
    # (dst, src) pair, which holds for any realistic graph.
    return adj, d_inv_sqrt


def gcn_conv(a_hat, d_dst, h_src, w, b, *, relu, scale_out, tm, tk, out_dtype):
    """One GCNConv layer on pre-scaled inputs.

    h_src is already scaled by the source-side D^{-1/2}; this computes
        out = act( ((A_hat @ h_src) * d_dst) @ W + b )       (act = relu or id)
    and, if scale_out, multiplies the result by d_dst once more so it is
    already source-scaled for the next layer.
    """
    n_pad = a_hat.shape[0]
    f_in = h_src.shape[1]
    f_out = w.shape[1]
    grid = (n_pad // tm, n_pad // tk)

    def kernel(a_ref, h_ref, d_ref, w_ref, b_ref, o_ref, acc_ref):
        k = pl.program_id(1)
        # int8 A tile -> bf16 (VPU), bf16 x bf16 MXU matmul, f32 accumulate.
        partial = jnp.dot(a_ref[...].astype(jnp.bfloat16), h_ref[...],
                          preferred_element_type=jnp.float32)

        @pl.when(k == 0)
        def _init():                 # first K step: write, don't zero+add
            acc_ref[...] = partial

        @pl.when(k > 0)
        def _accumulate():
            acc_ref[...] += partial

        @pl.when(k == pl.num_programs(1) - 1)
        def _finalize():             # projection/bias/relu once per row tile
            out = acc_ref[...] * d_ref[...]                  # dest-side D^-1/2
            out = jnp.dot(out, w_ref[...],
                          preferred_element_type=jnp.float32)
            out = out + b_ref[...]
            if relu:
                out = jnp.maximum(out, 0.0)
            if scale_out:            # fold next layer's source-side D^-1/2
                out = out * d_ref[...]
            o_ref[...] = out.astype(o_ref.dtype)

    flops = int(2 * n_pad * n_pad * f_in + 2 * n_pad * f_in * f_out)
    bytes_accessed = int(
        n_pad * n_pad * a_hat.dtype.itemsize                     # A_hat (int8)
        + (n_pad // tm) * n_pad * f_in * h_src.dtype.itemsize    # H per row tile
        + n_pad * f_out * jnp.dtype(out_dtype).itemsize          # output
        + f_in * f_out * 4 + f_out * 4 + n_pad * 4)

    return pl.pallas_call(
        kernel,
        out_shape=jax.ShapeDtypeStruct((n_pad, f_out), out_dtype),
        grid_spec=pltpu.PrefetchScalarGridSpec(
            num_scalar_prefetch=0,
            grid=grid,
            in_specs=[
                pl.BlockSpec((tm, tk), lambda i, k: (i, k)),       # A_hat int8
                pl.BlockSpec((tk, f_in), lambda i, k: (k, 0)),     # H (bf16)
                pl.BlockSpec((tm, 1), lambda i, k: (i, 0)),        # d^-1/2 dst
                pl.BlockSpec((f_in, f_out), lambda i, k: (0, 0)),  # W resident
                pl.BlockSpec((1, f_out), lambda i, k: (0, 0)),     # b resident
            ],
            out_specs=pl.BlockSpec((tm, f_out), lambda i, k: (i, 0)),
            scratch_shapes=[pltpu.VMEM((tm, f_in), jnp.float32)],
        ),
        compiler_params=pltpu.CompilerParams(
            dimension_semantics=("parallel", "arbitrary"),
            vmem_limit_bytes=32 * 1024 * 1024),
        cost_estimate=pl.CostEstimate(flops=flops, transcendentals=0,
                                      bytes_accessed=bytes_accessed),
    )(a_hat, h_src, d_dst, w, b)


def gcn_forward(x, edge_index, params):
    w1, b1, w2, b2, w3, b3 = params
    n, in_dim = x.shape
    hid = w1.shape[1]
    out_dim = w3.shape[1]

    adj, d_inv_sqrt = build_graph(edge_index, n)             # plain-JAX glue

    n_pad, tm, tk = _pick_tiling(n)

    # A_hat as exact small-int counts in int8; padded rows/cols are zero.
    a_p = jnp.zeros((n_pad, n_pad), jnp.int8).at[:n, :n].set(
        adj.astype(jnp.int8))
    d_p = jnp.zeros((n_pad, 1), jnp.float32).at[:n, 0].set(d_inv_sqrt)

    # lane-pad every feature dim to a multiple of 128 -> lane-dense H loads
    # and unmasked output stores in every layer (padding cols are exact zeros).
    f_in_p = _round_up(in_dim, 128)
    f_hid_p = _round_up(hid, 128)
    f_out_p = _round_up(out_dim, 128)

    def pad2(m, rows, cols):
        return jnp.zeros((rows, cols), jnp.float32).at[
            :m.shape[0], :m.shape[1]].set(m)

    w1_p, b1_p = pad2(w1, f_in_p, f_hid_p), pad2(b1, 1, f_hid_p)
    w2_p, b2_p = pad2(w2, f_hid_p, f_hid_p), pad2(b2, 1, f_hid_p)
    w3_p, b3_p = pad2(w3, f_hid_p, f_out_p), pad2(b3, 1, f_out_p)

    # layer 1's source-side D^{-1/2} folded into x once; bf16 activations.
    x_p = jnp.zeros((n_pad, f_in_p), jnp.bfloat16).at[:n, :in_dim].set(
        (x * d_inv_sqrt[:, None]).astype(jnp.bfloat16))

    h = gcn_conv(a_p, d_p, x_p, w1_p, b1_p, relu=True, scale_out=True,
                 tm=tm, tk=tk, out_dtype=jnp.bfloat16)
    h = gcn_conv(a_p, d_p, h, w2_p, b2_p, relu=True, scale_out=True,
                 tm=tm, tk=tk, out_dtype=jnp.bfloat16)
    h = gcn_conv(a_p, d_p, h, w3_p, b3_p, relu=False, scale_out=False,
                 tm=tm, tk=tk, out_dtype=jnp.float32)
    return h[:n, :out_dim]


def init_params(key, input_dim, hidden_dim, output_dim):
    """Glorot-uniform weights, zero biases (PyG GCNConv defaults)."""
    def glorot(k, fan_in, fan_out):
        limit = jnp.sqrt(6.0 / (fan_in + fan_out))
        return jax.random.uniform(k, (fan_in, fan_out), jnp.float32,
                                  -limit, limit)
    k1, k2, k3 = jax.random.split(key, 3)
    w1 = glorot(k1, input_dim, hidden_dim)
    w2 = glorot(k2, hidden_dim, hidden_dim)
    w3 = glorot(k3, hidden_dim, output_dim)
    # biases kept 2-D ([1, F]) so they stay lane-major inside the kernel
    b1 = jnp.zeros((1, hidden_dim), jnp.float32)
    b2 = jnp.zeros((1, hidden_dim), jnp.float32)
    b3 = jnp.zeros((1, output_dim), jnp.float32)
    return (w1, b1, w2, b2, w3, b3)


def gcn_reference(x, edge_index, params):
    """Pure-JAX f32 dense reference of the PyTorch module."""
    w1, b1, w2, b2, w3, b3 = params
    adj, d = build_graph(edge_index, x.shape[0])
    a_norm = d[:, None] * adj * d[None, :]
    h = jnp.maximum(a_norm @ (x @ w1) + b1, 0.0)
    h = jnp.maximum(a_norm @ (h @ w2) + b2, 0.0)
    return a_norm @ (h @ w3) + b3


if __name__ == "__main__":
    input_dim, hidden_dim, output_dim = 8, 32, 4
    num_nodes, num_edges = 16, 32

    key = jax.random.PRNGKey(0)
    kx, ke, kp = jax.random.split(key, 3)

    x = jax.random.normal(kx, (num_nodes, input_dim), jnp.float32)
    edge_index = jax.random.randint(ke, (2, num_edges), 0, num_nodes,
                                    dtype=jnp.int32)
    params = init_params(kp, input_dim, hidden_dim, output_dim)

    out = gcn_forward(x, edge_index, params)
    jax.block_until_ready(out)

    assert out.shape == (num_nodes, output_dim)
    assert jnp.all(jnp.isfinite(out))
    # loose tolerance: intermediate activations are stored in bf16
    ref = gcn_reference(x, edge_index, params)
    assert jnp.allclose(out, ref, atol=5e-2, rtol=5e-2), (
        float(jnp.max(jnp.abs(out - ref))))
    print("KERNEL_OK")
</pallas_src>

<mosaic_0001>
module attributes {stable_mosaic.version = 11 : i64} {
  func.func @kernel(%arg0: i32, %arg1: i32, %arg2: memref<128x128xi8, #tpu.memory_space<vmem>>, %arg3: memref<128x128xbf16, #tpu.memory_space<vmem>>, %arg4: memref<128x1xf32, #tpu.memory_space<vmem>>, %arg5: memref<128x128xf32, #tpu.memory_space<vmem>>, %arg6: memref<1x128xf32, #tpu.memory_space<vmem>>, %arg7: memref<128x128xbf16, #tpu.memory_space<vmem>>, %arg8: memref<128x128xf32, #tpu.memory_space<vmem>>) attributes {dimension_semantics = [#tpu.dimension_semantics<parallel>, #tpu.dimension_semantics<arbitrary>], iteration_bounds = array<i64: 1, 1>, scalar_prefetch = 0 : i64, scratch_operands = 1 : i64, tpu.core_type = #tpu.core_type<tc>, window_params = [{transform_indices = @transform_0, window_bounds = array<i64: 128, 128>}, {transform_indices = @transform_1, window_bounds = array<i64: 128, 128>}, {transform_indices = @transform_2, window_bounds = array<i64: 128, 1>}, {pipeline_mode = #tpu.pipeline_mode<synchronous>, transform_indices = @transform_3, window_bounds = array<i64: 128, 128>}, {pipeline_mode = #tpu.pipeline_mode<synchronous>, transform_indices = @transform_4, window_bounds = array<i64: 1, 128>}, {transform_indices = @transform_5, window_bounds = array<i64: 128, 128>}]} {
    %c0 = arith.constant 0 : index
    %c0_0 = arith.constant 0 : index
    %0 = vector.load %arg2[%c0, %c0_0] : memref<128x128xi8, #tpu.memory_space<vmem>>, vector<128x128xi8>
    %1 = arith.sitofp %0 : vector<128x128xi8> to vector<128x128xbf16>
    %c0_1 = arith.constant 0 : index
    %c0_2 = arith.constant 0 : index
    %2 = vector.load %arg3[%c0_1, %c0_2] : memref<128x128xbf16, #tpu.memory_space<vmem>>, vector<128x128xbf16>
    %cst = arith.constant dense<0.000000e+00> : vector<128x128xf32>
    %3 = tpu.matmul %1, %2, %cst {dimension_numbers = #tpu.dot_dimension_numbers<[1], [0], [0], [1], [0, 0, 1, 1], [], []>} : vector<128x128xbf16>, vector<128x128xbf16>, vector<128x128xf32> -> vector<128x128xf32>
    %c0_i32 = arith.constant 0 : i32
    %4 = arith.cmpi eq, %arg1, %c0_i32 : i32
    %5 = arith.extui %4 : i1 to i32
    %c0_i32_3 = arith.constant 0 : i32
    %6 = arith.cmpi ne, %5, %c0_i32_3 : i32
    scf.if %6 {
      %c0_8 = arith.constant 0 : index
      %c0_9 = arith.constant 0 : index
      %13 = vector.load %arg8[%c0_8, %c0_9] : memref<128x128xf32, #tpu.memory_space<vmem>>, vector<128x128xf32>
      tpu.vector_store %arg8[%c0_8, %c0_9], %3 {strides = array<i32>} : memref<128x128xf32, #tpu.memory_space<vmem>>, vector<128x128xf32>,
    } else {
    }
    %c0_i32_4 = arith.constant 0 : i32
    %7 = arith.cmpi sgt, %arg1, %c0_i32_4 : i32
    %8 = arith.extui %7 : i1 to i32
    %c0_i32_5 = arith.constant 0 : i32
    %9 = arith.cmpi ne, %8, %c0_i32_5 : i32
    scf.if %9 {
      %c0_8 = arith.constant 0 : index
      %c0_9 = arith.constant 0 : index
      %13 = vector.load %arg8[%c0_8, %c0_9] : memref<128x128xf32, #tpu.memory_space<vmem>>, vector<128x128xf32>
      %14 = arith.addf %13, %3 : vector<128x128xf32>
      %c0_10 = arith.constant 0 : index
      %c0_11 = arith.constant 0 : index
      %15 = vector.load %arg8[%c0_10, %c0_11] : memref<128x128xf32, #tpu.memory_space<vmem>>, vector<128x128xf32>
      tpu.vector_store %arg8[%c0_10, %c0_11], %14 {strides = array<i32>} : memref<128x128xf32, #tpu.memory_space<vmem>>, vector<128x128xf32>,
    } else {
    }
    %c0_i32_6 = arith.constant 0 : i32
    %10 = arith.cmpi eq, %arg1, %c0_i32_6 : i32
    %11 = arith.extui %10 : i1 to i32
    %c0_i32_7 = arith.constant 0 : i32
    %12 = arith.cmpi ne, %11, %c0_i32_7 : i32
    scf.if %12 {
      %c0_8 = arith.constant 0 : index
      %c0_9 = arith.constant 0 : index
      %13 = vector.load %arg8[%c0_8, %c0_9] : memref<128x128xf32, #tpu.memory_space<vmem>>, vector<128x128xf32>
      %c0_10 = arith.constant 0 : index
      %c0_11 = arith.constant 0 : index
      %14 = vector.load %arg4[%c0_10, %c0_11] : memref<128x1xf32, #tpu.memory_space<vmem>>, vector<128x1xf32>
      %15 = vector.broadcast %14 : vector<128x1xf32> to vector<128x128xf32>
      %16 = arith.mulf %13, %15 : vector<128x128xf32>
      %c0_12 = arith.constant 0 : index
      %c0_13 = arith.constant 0 : index
      %17 = vector.load %arg5[%c0_12, %c0_13] : memref<128x128xf32, #tpu.memory_space<vmem>>, vector<128x128xf32>
      %cst_14 = arith.constant dense<0.000000e+00> : vector<128x128xf32>
      %18 = tpu.matmul %16, %17, %cst_14 {dimension_numbers = #tpu.dot_dimension_numbers<[1], [0], [0], [1], [0, 0, 1, 1], [], []>} : vector<128x128xf32>, vector<128x128xf32>, vector<128x128xf32> -> vector<128x128xf32>
      %c0_15 = arith.constant 0 : index
      %c0_16 = arith.constant 0 : index
      %19 = vector.load %arg6[%c0_15, %c0_16] : memref<1x128xf32, #tpu.memory_space<vmem>>, vector<1x128xf32>
      %20 = vector.broadcast %19 : vector<1x128xf32> to vector<128x128xf32>
      %21 = arith.addf %18, %20 : vector<128x128xf32>
      %cst_17 = arith.constant 0.000000e+00 : f32
      %22 = vector.broadcast %cst_17 : f32 to vector<128x128xf32>
      %23 = arith.maximumf %21, %22 : vector<128x128xf32>
      %c0_18 = arith.constant 0 : index
      %c0_19 = arith.constant 0 : index
      %24 = vector.load %arg4[%c0_18, %c0_19] : memref<128x1xf32, #tpu.memory_space<vmem>>, vector<128x1xf32>
      %25 = vector.broadcast %24 : vector<128x1xf32> to vector<128x128xf32>
      %26 = arith.mulf %23, %25 : vector<128x128xf32>
      %27 = arith.truncf %26 : vector<128x128xf32> to vector<128x128xbf16>
      %c0_20 = arith.constant 0 : index
      %c0_21 = arith.constant 0 : index
      %28 = vector.load %arg7[%c0_20, %c0_21] : memref<128x128xbf16, #tpu.memory_space<vmem>>, vector<128x128xbf16>
      tpu.vector_store %arg7[%c0_20, %c0_21], %27 {strides = array<i32>} : memref<128x128xbf16, #tpu.memory_space<vmem>>, vector<128x128xbf16>,
    } else {
    }
    return
  }
  func.func @transform_0(%arg0: i32, %arg1: i32) -> (i32, i32) {
    %c0_i32 = arith.constant 0 : i32
    return %arg0, %arg1 : i32, i32
  }
  func.func @transform_1(%arg0: i32, %arg1: i32) -> (i32, i32) {
    %c0_i32 = arith.constant 0 : i32
    %c0_i32_0 = arith.constant 0 : i32
    return %arg1, %c0_i32 : i32, i32
  }
  func.func @transform_2(%arg0: i32, %arg1: i32) -> (i32, i32) {
    %c0_i32 = arith.constant 0 : i32
    %c0_i32_0 = arith.constant 0 : i32
    return %arg0, %c0_i32 : i32, i32
  }
  func.func @transform_3(%arg0: i32, %arg1: i32) -> (i32, i32) {
    %c0_i32 = arith.constant 0 : i32
    %c0_i32_0 = arith.constant 0 : i32
    %c0_i32_1 = arith.constant 0 : i32
    return %c0_i32, %c0_i32_0 : i32, i32
  }
  func.func @transform_4(%arg0: i32, %arg1: i32) -> (i32, i32) {
    %c0_i32 = arith.constant 0 : i32
    %c0_i32_0 = arith.constant 0 : i32
    %c0_i32_1 = arith.constant 0 : i32
    return %c0_i32, %c0_i32_0 : i32, i32
  }
  func.func @transform_5(%arg0: i32, %arg1: i32) -> (i32, i32) {
    %c0_i32 = arith.constant 0 : i32
    %c0_i32_0 = arith.constant 0 : i32
    return %arg0, %c0_i32 : i32, i32
  }
}

</mosaic_0001>

<bundles_post_ra>
// kernel: tpu_custom_call.1
= control target key start
LH: loop header
LB: loop body
LE: loop exit
PB: predicated region body
PF: predicated region fallthrough
CT: control target
= control target key end

     0   :  { %10 = vsyncpa [#allocation4], 0  ;;  %s1335_s0 = inlined_call_operand.hbm [shape: s8[128,128], index: 0, kind: input, shape index: {}]   ;;  %s1336_s1 = inlined_call_operand.hbm [shape: bf16[128,128], index: 1, kind: input, shape index: {}]   ;;  %s1337_s2 = inlined_call_operand.vmem [shape: f32[128,1], index: 2, kind: input, shape index: {}]   ;;  %s1338_s3 = inlined_call_operand.vmem [shape: f32[128,128], index: 3, kind: input, shape index: {}]   ;;  %s1339_s4 = inlined_call_operand.vmem [shape: f32[1,128], index: 4, kind: input, shape index: {}]   ;;  %s1340_s5 = inlined_call_operand.hbm [shape: bf16[128,128], index: 5, kind: output, shape index: {}]  }
   0x1   :  { %11 = vsyncpa [#allocation7], 0 }
   0x2   :  { %12 = vsyncpa [#allocation5], 0  ;;  %s1070_s18 = smov [#allocation3]   ;;  %s998_s22 = scalar_lea.hbm %s1335_s0, 512 }
   0x3   :  { %s18_s19 = sshll.u32 %s1070_s18, 4  ;;  %p999_p0 = scmp.ne.s32.totalorder %s1335_s0, %s998_s22  ;;  %s19_s19 = int_to_ptr.vmem [resolvable:$true] %s18_s19 }
   0x4   :  { %p1002_p1 = scmp.lt.u32.totalorder %s998_s22, %s1335_s0 }
   0x6   :  { %p1004_p2 = pnand %p1002_p1, %p999_p0 }
   0x8   :  { %1007 = shalt.err (!%p1004_p2)
}
   0x9   :  { %s1008_s27 = scalar_lea.vmem %s19_s19, 512  ;;  %p1013_p4 = scmp.lt.s32.totalorder %s19_s19, %s19_s19 }
   0xa   :  { %p1009_p3 = scmp.ne.s32.totalorder %s19_s19, %s1008_s27  ;;  %p1014_p5 = scmp.lt.s32.totalorder %s1008_s27, %s1008_s27 }
   0xc   :  { %p1015_p6 = por %p1014_p5, %p1013_p4 }
   0xe   :  { %p1016_p7 = pnand %p1015_p6, %p1009_p3 }
  0x10   :  { %1019 = shalt.err (!%p1016_p7)
}
  0x11   :  { %s1071_s28 = smov 128   ;;  %s1072_s29 = smov 8  }
  0x12   :  { %24 = dma.hbm_to_vmem [thread:$0]  %s1335_s0, 512, %s19_s19, [#allocation4], %s1071_s28, %s1071_s28, %s1072_s29  }
  0x13   :  { %s1073_s7 = smov [#allocation6]   ;;  %s1020_s11 = scalar_lea.hbm %s1336_s1, 1024 }
  0x14   :  { %s30_s8 = sshll.u32 %s1073_s7, 4  ;;  %p1021_p8 = scmp.ne.s32.totalorder %s1336_s1, %s1020_s11  ;;  %s31_s8 = int_to_ptr.vmem [resolvable:$true] %s30_s8 }
  0x15   :  { %p1024_p9 = scmp.lt.u32.totalorder %s1020_s11, %s1336_s1 }
  0x17   :  { %p1026_p10 = pnand %p1024_p9, %p1021_p8 }
  0x19   :  { %1029 = shalt.err (!%p1026_p10)
}
  0x1a   :  { %s1030_s16 = scalar_lea.vmem %s31_s8, 1024  ;;  %p1035_p12 = scmp.lt.s32.totalorder %s31_s8, %s31_s8 }
  0x1b   :  { %p1031_p11 = scmp.ne.s32.totalorder %s31_s8, %s1030_s16  ;;  %p1036_p13 = scmp.lt.s32.totalorder %s1030_s16, %s1030_s16 }
  0x1d   :  { %p1037_p0 = por %p1036_p13, %p1035_p12 }
  0x1f   :  { %p1038_p1 = pnand %p1037_p0, %p1031_p11 }
  0x21   :  { %1041 = shalt.err (!%p1038_p1)
}
  0x22   :  { %s1074_s0 = smov 64   ;;  %s1075_s17 = smov 4  }
  0x23   :  { %36 = dma.hbm_to_vmem [thread:$0]  %s1336_s1, 1024, %s31_s8, [#allocation7], %s1074_s0, %s1074_s0, %s1075_s17  }
  0x24   :  { %1064 = dma.done.wait [#allocation4], 512  }
  0x25   :  { %1065 = vsyncadd [#allocation4], 4294966784 }
  0x26   :  { %1066 = dma.done.wait [#allocation7], 1024  }
  0x27   :  { %1067 = vsyncadd [#allocation7], 4294966272  ;;  %v1076_v0 = vmov 0   ;;  %v990_v1 = vld [vmem:[#allocation6] sm:$0xff]   ;;  %v991_v2 = vld [vmem:[#allocation6 + $0x8] sm:$0xff]  }
  0x28   :  { %988 = vset.pattern.permute.xlu0 %v1076_v0  ;;  %989 = vset.pattern.permute.xlu1 %v1076_v0  ;;  %v992_v3 = vld [vmem:[#allocation6 + $0x10] sm:$0xff]   ;;  %v993_v4 = vld [vmem:[#allocation6 + $0x18] sm:$0xff]   ;;  %v1135_v5 = vld [vmem:[#allocation3] sm:$0xff] }
  0x29   :  { %860 = vmatprep.subr.bf16.mxu0 %v990_v1  ;;  %v54_v6 = vunpack.c.l.s8.bf16 %v1135_v5  ;;  %v314_v7 = vld [vmem:[%s1337_s2] sm:$0xff]  ;;  %v316_v8 = vld [vmem:[%s1337_s2 + $0x10] sm:$0xff]  ;;  %v315_v9 = vld [vmem:[%s1337_s2 + $0x8] sm:$0xff]  ;;  %v55_v39 = vunpack.c.h.s8.bf16 %v1135_v5 }
  0x2a   :  { %861 = vmatpush3.bf16.msra.mxu0 %v990_v1  ;;  %332 = vperm.xlu0 %988, %v314_v7   ;;  %v317_v10 = vld [vmem:[%s1337_s2 + $0x18] sm:$0xff]  ;;  %v994_v11 = vld [vmem:[#allocation6 + $0x20] sm:$0xff]   ;;  %v319_v13 = vld [vmem:[%s1337_s2 + $0x28] sm:$0xff] }
  0x2b   :  { %862 = vmatprep.subr.bf16.mxu0 %v991_v2  ;;  %342 = vperm.xlu1 %989, %v316_v8   ;;  %v318_v12 = vld [vmem:[%s1337_s2 + $0x20] sm:$0xff]  ;;  %v427_v15 = vld [vmem:[%s1338_s3 + $0x8] sm:$0xff]  ;;  %v428_v16 = vld [vmem:[%s1338_s3 + $0x10] sm:$0xff] }
  0x2c   :  { %876 = vmatprep.mubr.bf16.mxu0 %v54_v6  ;;  %v426_v14 = vld [vmem:[%s1338_s3] sm:$0xff]  ;;  %v429_v17 = vld [vmem:[%s1338_s3 + $0x18] sm:$0xff]  ;;  %v995_v18 = vld [vmem:[#allocation6 + $0x28] sm:$0xff]  }
  0x2d   :  { %v948_v19 = vpack.c.bf16 %v427_v15, %v426_v14  ;;  %v952_v20 = vpack.c.bf16 %v429_v17, %v428_v16  ;;  %v430_v21 = vld [vmem:[%s1338_s3 + $0x20] sm:$0xff]  ;;  %v431_v22 = vld [vmem:[%s1338_s3 + $0x28] sm:$0xff]  ;;  %v320_v23 = vld [vmem:[%s1337_s2 + $0x30] sm:$0xff] }
  0x2e   :  { %863 = vmatpush3.bf16.msra.mxu0 %v991_v2  ;;  %337 = vperm.xlu0 %988, %v315_v9   ;;  %v321_v24 = vld [vmem:[%s1337_s2 + $0x38] sm:$0xff]  ;;  %v996_v25 = vld [vmem:[#allocation6 + $0x30] sm:$0xff]   ;;  %v956_v26 = vpack.c.bf16 %v431_v22, %v430_v21  ;;  %v322_v29 = vld [vmem:[%s1337_s2 + $0x40] sm:$0xff] }
  0x2f   :  { %864 = vmatprep.subr.bf16.mxu0 %v992_v3  ;;  %347 = vperm.xlu1 %989, %v317_v10   ;;  %v432_v27 = vld [vmem:[%s1338_s3 + $0x30] sm:$0xff]  ;;  %v433_v28 = vld [vmem:[%s1338_s3 + $0x38] sm:$0xff]  ;;  %v323_v30 = vld [vmem:[%s1337_s2 + $0x48] sm:$0xff] }
  0x30   :  { %949 = vmatprep.subr.bf16.mxu1 %v948_v19  ;;  %v997_v31 = vld [vmem:[#allocation6 + $0x38] sm:$0xff]   ;;  %v960_v32 = vpack.c.bf16 %v433_v28, %v432_v27  ;;  %v434_v33 = vld [vmem:[%s1338_s3 + $0x40] sm:$0xff]  ;;  %v435_v34 = vld [vmem:[%s1338_s3 + $0x48] sm:$0xff] }
  0x31   :  { %951 = vmatpush3.bf16.msra.mxu1 %v948_v19  ;;  %v324_v35 = vld [vmem:[%s1337_s2 + $0x50] sm:$0xff]  ;;  %v325_v36 = vld [vmem:[%s1337_s2 + $0x58] sm:$0xff]  ;;  %v51_v37 = vld [vmem:[#allocation3 + $0x8] sm:$0xff]  ;;  %v964_v38 = vpack.c.bf16 %v435_v34, %v434_v33 }
  0x32   :  { %865 = vmatpush3.bf16.msra.mxu0 %v992_v3  ;;  %352 = vperm.xlu0 %988, %v318_v12   ;;  %v436_v40 = vld [vmem:[%s1338_s3 + $0x50] sm:$0xff]  ;;  %v437_v41 = vld [vmem:[%s1338_s3 + $0x58] sm:$0xff]  ;;  %v56_v42 = vunpack.c.l.s8.bf16 %v51_v37  ;;  %v326_v43 = vld [vmem:[%s1337_s2 + $0x60] sm:$0xff]  ;;  %v57_v52 = vunpack.c.h.s8.bf16 %v51_v37 }
  0x33   :  { %866 = vmatprep.subr.bf16.mxu0 %v993_v4  ;;  %357 = vperm.xlu1 %989, %v319_v13   ;;  %v327_v44 = vld [vmem:[%s1337_s2 + $0x68] sm:$0xff]  ;;  %v968_v45 = vpack.c.bf16 %v437_v41, %v436_v40  ;;  %v438_v46 = vld [vmem:[%s1338_s3 + $0x60] sm:$0xff]  ;;  %v328_v48 = vld [vmem:[%s1337_s2 + $0x70] sm:$0xff] }
  0x34   :  { %953 = vmatprep.subr.bf16.mxu1 %v952_v20  ;;  %v439_v47 = vld [vmem:[%s1338_s3 + $0x68] sm:$0xff]  ;;  %v52_v49 = vld [vmem:[#allocation3 + $0x10] sm:$0xff]  ;;  %v329_v50 = vld [vmem:[%s1337_s2 + $0x78] sm:$0xff] }
  0x35   :  { %955 = vmatpush3.bf16.msra.mxu1 %v952_v20  ;;  %v972_v51 = vpack.c.bf16 %v439_v47, %v438_v46  ;;  %v58_v53 = vunpack.c.l.s8.bf16 %v52_v49  ;;  %v53_v54 = vld [vmem:[#allocation3 + $0x18] sm:$0xff]  ;;  %v59_v55 = vunpack.c.h.s8.bf16 %v52_v49  ;;  %v440_v58 = vld [vmem:[%s1338_s3 + $0x70] sm:$0xff] }
  0x36   :  { %867 = vmatpush3.bf16.msra.mxu0 %v993_v4  ;;  %362 = vperm.xlu0 %988, %v320_v23   ;;  %v60_v56 = vunpack.c.l.s8.bf16 %v53_v54  ;;  %v61_v57 = vunpack.c.h.s8.bf16 %v53_v54  ;;  %v441_v59 = vld [vmem:[%s1338_s3 + $0x78] sm:$0xff] }
  0x37   :  { %868 = vmatprep.subr.bf16.mxu0 %v994_v11  ;;  %367 = vperm.xlu1 %989, %v321_v24   ;;  %v976_v60 = vpack.c.bf16 %v441_v59, %v440_v58 }
  0x38   :  { %957 = vmatprep.subr.bf16.mxu1 %v956_v26 }
  0x39   :  { %959 = vmatpush3.bf16.msra.mxu1 %v956_v26 }
  0x3a   :  { %869 = vmatpush3.bf16.msra.mxu0 %v994_v11  ;;  %372 = vperm.xlu0 %988, %v322_v29  }
  0x3b   :  { %870 = vmatprep.subr.bf16.mxu0 %v995_v18  ;;  %377 = vperm.xlu1 %989, %v323_v30  }
  0x3c   :  { %961 = vmatprep.subr.bf16.mxu1 %v960_v32 }
  0x3d   :  { %963 = vmatpush3.bf16.msra.mxu1 %v960_v32 }
  0x3e   :  { %871 = vmatpush3.bf16.msra.mxu0 %v995_v18  ;;  %382 = vperm.xlu0 %988, %v324_v35  }
  0x3f   :  { %872 = vmatprep.subr.bf16.mxu0 %v996_v25  ;;  %387 = vperm.xlu1 %989, %v325_v36  }
  0x40   :  { %965 = vmatprep.subr.bf16.mxu1 %v964_v38 }
  0x41   :  { %967 = vmatpush3.bf16.msra.mxu1 %v964_v38 }
  0x42   :  { %873 = vmatpush3.bf16.msra.mxu0 %v996_v25  ;;  %392 = vperm.xlu0 %988, %v326_v43  }
  0x43   :  { %874 = vmatprep.subr.bf16.mxu0 %v997_v31  ;;  %397 = vperm.xlu1 %989, %v327_v44  }
  0x44   :  { %969 = vmatprep.subr.bf16.mxu1 %v968_v45 }
  0x45   :  { %971 = vmatpush3.bf16.msra.mxu1 %v968_v45  ;;  %v1286_v45 = vld [vmem:[%s1339_s4] ss:$0 sm:$0xff]  ;;  %s1077_s4 = smov [#allocation8]  }
  0x46   :  { %875 = vmatpush3.bf16.msra.mxu0 %v997_v31  ;;  %402 = vperm.xlu0 %988, %v328_v48   ;;  %s711_s8 = sshll.u32 %s1077_s4, 4  ;;  %s712_s8 = int_to_ptr.vmem [resolvable:$true] %s711_s8 }
  0x47   :  { %407 = vperm.xlu1 %989, %v329_v50   ;;  %973 = vmatprep.subr.bf16.mxu1 %v972_v51  ;;  %s1042_s9 = scalar_lea.vmem %s712_s8, 1024  ;;  %p1047_p3 = scmp.lt.s32.totalorder %s712_s8, %s712_s8 }
  0x48   :  { %p1043_p2 = scmp.ne.s32.totalorder %s712_s8, %s1042_s9  ;;  %p1048_p4 = scmp.lt.s32.totalorder %s1042_s9, %s1042_s9 }
  0x49   :  { %877 = vmatmul.mubr.bf16.vlgmr.msra.gmra.mrb[0].mxu0 %v55_v39  ;;  %975 = vmatpush3.bf16.msra.mxu1 %v972_v51 }
  0x4a   :  { %880 = vmatprep.mubr.bf16.mxu0 %v56_v42  ;;  %977 = vmatprep.subr.bf16.mxu1 %v976_v60  ;;  %p1049_p5 = por %p1048_p4, %p1047_p3 }
  0x4c   :  { %p1050_p6 = pnand %p1049_p5, %p1043_p2 }
  0x4d   :  { %979 = vmatpush3.bf16.msra.mxu1 %v976_v60 }
  0x51   :  { %881 = vmatmul.mubr.bf16.gmra.mrb[4].mxu0 %v57_v52 }
  0x52   :  { %884 = vmatprep.mubr.bf16.mxu0 %v58_v53 }
  0x59   :  { %885 = vmatmul.mubr.bf16.gmra.mrb[8].mxu0 %v59_v55 }
  0x5a   :  { %888 = vmatprep.mubr.bf16.mxu0 %v60_v56 }
  0x61   :  { %889 = vmatmul.mubr.bf16.gmra.mrb[12].mxu0 %v61_v57 }
  0xa9   :  { %v1235_v61 = vpop.permute.xlu0 %332 }
  0xaa   :  { %v1237_v62 = vpop.permute.xlu1 %342 }
  0xad   :  { %v1239_v63 = vpop.permute.xlu0 %337 }
  0xae   :  { %v1241_v0 = vpop.permute.xlu1 %347 }
  0xb1   :  { %v1243_v1 = vpop.permute.xlu0 %352 }
  0xb2   :  { %v1245_v3 = vpop.permute.xlu1 %357 }
  0xb5   :  { %v1248_v8 = vpop.permute.xlu0 %362 }
  0xb6   :  { %v1252_v11 = vpop.permute.xlu1 %367 }
  0xb9   :  { %v1255_v15 = vpop.permute.xlu0 %372 }
  0xba   :  { %v1259_v20 = vpop.permute.xlu1 %377 }
  0xbd   :  { %v1262_v22 = vpop.permute.xlu0 %382 }
  0xbe   :  { %v1266_v28 = vpop.permute.xlu1 %387 }
  0xc1   :  { %v1270_v32 = vpop.permute.xlu0 %392 }
  0xc2   :  { %v1273_v35 = vpop.permute.xlu1 %397 }
  0xc5   :  { %v1276_v40 = vpop.permute.xlu0 %402 }
  0xc6   :  { %v1280_v43 = vpop.permute.xlu1 %407 }
 0x11c   :  { %v878_v2 = vpop.f32.mrb[0].mxu0 }
 0x11d   :  { %v160_v4 = vpop.f32.mrb[1].mxu0  ;;  %v412_v10 = vmul.f32 %v878_v2, %v1237_v62 }
 0x11e   :  { %v879_v5 = vpop.f32.mrb[2].mxu0  ;;  %v410_v6 = vmul.f32 %v1235_v61, %v160_v4 }
 0x11f   :  { %v163_v7 = vpop.f32.mrb[3].mxu0  ;;  %v413_v12 = vmul.f32 %v879_v5, %v1241_v0 }
 0x120   :  { %v411_v9 = vmul.f32 %v1239_v63, %v163_v7  ;;  %924 = vmatprep.mubr.f32.mxu1 %v410_v6 }
 0x122   :  { %925 = vmatmul.mubr.f32.vlgmr.msra.gmra.mrb[0].mxu1 %v411_v9 }
 0x123   :  { %927 = vmatprep.mubr.f32.mxu1 %v412_v10 }
 0x124   :  { %v882_v13 = vpop.f32.mrb[4].mxu0 }
 0x125   :  { %v176_v14 = vpop.f32.mrb[5].mxu0  ;;  %v416_v21 = vmul.f32 %v882_v13, %v1248_v8 }
 0x126   :  { %v414_v16 = vmul.f32 %v1243_v1, %v176_v14  ;;  %v883_v17 = vpop.f32.mrb[6].mxu0  ;;  %928 = vmatmul.mubr.f32.gmra.mrb[2].mxu1 %v413_v12 }
 0x127   :  { %v179_v18 = vpop.f32.mrb[7].mxu0  ;;  %v417_v23 = vmul.f32 %v883_v17, %v1252_v11 }
 0x128   :  { %v415_v19 = vmul.f32 %v1245_v3, %v179_v18  ;;  %930 = vmatprep.mubr.f32.mxu1 %v414_v16 }
 0x12a   :  { %931 = vmatmul.mubr.f32.gmra.mrb[4].mxu1 %v415_v19 }
 0x12b   :  { %933 = vmatprep.mubr.f32.mxu1 %v416_v21 }
 0x12c   :  { %v886_v24 = vpop.f32.mrb[8].mxu0 }
 0x12d   :  { %v192_v25 = vpop.f32.mrb[9].mxu0  ;;  %v420_v31 = vmul.f32 %v886_v24, %v1262_v22 }
 0x12e   :  { %v418_v26 = vmul.f32 %v1255_v15, %v192_v25  ;;  %v887_v27 = vpop.f32.mrb[10].mxu0  ;;  %934 = vmatmul.mubr.f32.gmra.mrb[6].mxu1 %v417_v23 }
 0x12f   :  { %v195_v29 = vpop.f32.mrb[11].mxu0  ;;  %v421_v33 = vmul.f32 %v887_v27, %v1266_v28 }
 0x130   :  { %v419_v30 = vmul.f32 %v1259_v20, %v195_v29  ;;  %936 = vmatprep.mubr.f32.mxu1 %v418_v26 }
 0x132   :  { %937 = vmatmul.mubr.f32.gmra.mrb[8].mxu1 %v419_v30 }
 0x133   :  { %939 = vmatprep.mubr.f32.mxu1 %v420_v31 }
 0x134   :  { %v890_v34 = vpop.f32.mrb[12].mxu0 }
 0x135   :  { %v208_v36 = vpop.f32.mrb[13].mxu0  ;;  %v424_v42 = vmul.f32 %v890_v34, %v1276_v40 }
 0x136   :  { %v422_v37 = vmul.f32 %v1270_v32, %v208_v36  ;;  %v891_v38 = vpop.f32.mrb[14].mxu0  ;;  %940 = vmatmul.mubr.f32.gmra.mrb[10].mxu1 %v421_v33 }
 0x137   :  { %v211_v39 = vpop.f32.mrb[15].mxu0  ;;  %v425_v44 = vmul.f32 %v891_v38, %v1280_v43 }
 0x138   :  { %v423_v41 = vmul.f32 %v1273_v35, %v211_v39  ;;  %942 = vmatprep.mubr.f32.mxu1 %v422_v37 }
 0x13a   :  { %943 = vmatmul.mubr.f32.gmra.mrb[12].mxu1 %v423_v41 }
 0x13b   :  { %945 = vmatprep.mubr.f32.mxu1 %v424_v42 }
 0x13e   :  { %946 = vmatmul.mubr.f32.gmra.mrb[14].mxu1 %v425_v44 }
 0x1f5   :  { %v926_v46 = vpop.f32.mrb[0].mxu1 }
 0x1f6   :  { %v521_v47 = vadd.f32 %v926_v46, %v1286_v45  ;;  %v515_v48 = vpop.f32.mrb[1].mxu1 }
 0x1f7   :  { %v516_v49 = vadd.f32 %v1286_v45, %v515_v48 }
 0x1f8   :  { %v595_v50 = vmax.f32 %v521_v47, 0.0 }
 0x1f9   :  { %v594_v51 = vmax.f32 %v516_v49, 0.0  ;;  %v929_v52 = vpop.f32.mrb[2].mxu1 }
 0x1fa   :  { %v611_v53 = vmul.f32 %v595_v50, %v1239_v63  ;;  %v531_v54 = vadd.f32 %v929_v52, %v1286_v45  ;;  %v525_v55 = vpop.f32.mrb[3].mxu1 }
 0x1fb   :  { %v610_v56 = vmul.f32 %v594_v51, %v1235_v61  ;;  %v526_v57 = vadd.f32 %v1286_v45, %v525_v55 }
 0x1fc   :  { %v597_v58 = vmax.f32 %v531_v54, 0.0 }
 0x1fd   :  { %v768_v59 = vpack.c.bf16 %v611_v53, %v610_v56  ;;  %v596_v60 = vmax.f32 %v526_v57, 0.0  ;;  %v932_v2 = vpop.f32.mrb[4].mxu1 }
 0x1fe   :  { %v613_v4 = vmul.f32 %v597_v58, %v1241_v0  ;;  %v541_v5 = vadd.f32 %v932_v2, %v1286_v45  ;;  %v535_v6 = vpop.f32.mrb[5].mxu1 }
 0x1ff   :  { %769 = vst [vmem:[#allocation8] sm:$0xff] %v768_v59   ;;  %v612_v7 = vmul.f32 %v596_v60, %v1237_v62  ;;  %v536_v63 = vadd.f32 %v1286_v45, %v535_v6 }
 0x200   :  { %v599_v9 = vmax.f32 %v541_v5, 0.0 }
 0x201   :  { %v773_v10 = vpack.c.bf16 %v613_v4, %v612_v7  ;;  %v598_v12 = vmax.f32 %v536_v63, 0.0  ;;  %v935_v61 = vpop.f32.mrb[6].mxu1 }
 0x202   :  { %v615_v13 = vmul.f32 %v599_v9, %v1245_v3  ;;  %v551_v14 = vadd.f32 %v935_v61, %v1286_v45  ;;  %v545_v16 = vpop.f32.mrb[7].mxu1 }
 0x203   :  { %805 = vst [vmem:[#allocation8 + $0x8] sm:$0xff] %v773_v10   ;;  %v614_v0 = vmul.f32 %v598_v12, %v1243_v1  ;;  %v546_v17 = vadd.f32 %v1286_v45, %v545_v16 }
 0x204   :  { %v601_v18 = vmax.f32 %v551_v14, 0.0 }
 0x205   :  { %v778_v19 = vpack.c.bf16 %v615_v13, %v614_v0  ;;  %v600_v21 = vmax.f32 %v546_v17, 0.0  ;;  %v938_v62 = vpop.f32.mrb[8].mxu1 }
 0x206   :  { %v617_v23 = vmul.f32 %v601_v18, %v1252_v11  ;;  %v561_v24 = vadd.f32 %v938_v62, %v1286_v45  ;;  %v555_v25 = vpop.f32.mrb[9].mxu1 }
 0x207   :  { %806 = vst [vmem:[#allocation8 + $0x10] sm:$0xff] %v778_v19   ;;  %v616_v3 = vmul.f32 %v600_v21, %v1248_v8  ;;  %v556_v26 = vadd.f32 %v1286_v45, %v555_v25 }
 0x208   :  { %v603_v27 = vmax.f32 %v561_v24, 0.0 }
 0x209   :  { %v783_v29 = vpack.c.bf16 %v617_v23, %v616_v3  ;;  %v602_v30 = vmax.f32 %v556_v26, 0.0  ;;  %v941_v1 = vpop.f32.mrb[10].mxu1 }
 0x20a   :  { %v619_v31 = vmul.f32 %v603_v27, %v1259_v20  ;;  %v571_v33 = vadd.f32 %v941_v1, %v1286_v45  ;;  %v565_v34 = vpop.f32.mrb[11].mxu1 }
 0x20b   :  { %807 = vst [vmem:[#allocation8 + $0x18] sm:$0xff] %v783_v29   ;;  %v618_v11 = vmul.f32 %v602_v30, %v1255_v15  ;;  %v566_v36 = vadd.f32 %v1286_v45, %v565_v34 }
 0x20c   :  { %v605_v37 = vmax.f32 %v571_v33, 0.0 }
 0x20d   :  { %v788_v38 = vpack.c.bf16 %v619_v31, %v618_v11  ;;  %v604_v39 = vmax.f32 %v566_v36, 0.0  ;;  %v944_v8 = vpop.f32.mrb[12].mxu1 }
 0x20e   :  { %v621_v41 = vmul.f32 %v605_v37, %v1266_v28  ;;  %v581_v42 = vadd.f32 %v944_v8, %v1286_v45  ;;  %v575_v44 = vpop.f32.mrb[13].mxu1 }
 0x20f   :  { %808 = vst [vmem:[#allocation8 + $0x20] sm:$0xff] %v788_v38   ;;  %v620_v20 = vmul.f32 %v604_v39, %v1262_v22  ;;  %v576_v46 = vadd.f32 %v1286_v45, %v575_v44 }
 0x210   :  { %v607_v47 = vmax.f32 %v581_v42, 0.0 }
 0x211   :  { %v793_v48 = vpack.c.bf16 %v621_v41, %v620_v20  ;;  %v606_v49 = vmax.f32 %v576_v46, 0.0  ;;  %v947_v15 = vpop.f32.mrb[14].mxu1 }
 0x212   :  { %v623_v50 = vmul.f32 %v607_v47, %v1273_v35  ;;  %v591_v51 = vadd.f32 %v947_v15, %v1286_v45  ;;  %v585_v52 = vpop.f32.mrb[15].mxu1 }
 0x213   :  { %809 = vst [vmem:[#allocation8 + $0x28] sm:$0xff] %v793_v48   ;;  %v622_v28 = vmul.f32 %v606_v49, %v1270_v32  ;;  %v586_v53 = vadd.f32 %v1286_v45, %v585_v52 }
 0x214   :  { %v609_v54 = vmax.f32 %v591_v51, 0.0 }
 0x215   :  { %v798_v55 = vpack.c.bf16 %v623_v50, %v622_v28  ;;  %v608_v56 = vmax.f32 %v586_v53, 0.0 }
 0x216   :  { %v625_v22 = vmul.f32 %v609_v54, %v1280_v43 }
 0x217   :  { %810 = vst [vmem:[#allocation8 + $0x30] sm:$0xff] %v798_v55   ;;  %v624_v57 = vmul.f32 %v608_v56, %v1276_v40 }
 0x219   :  { %v803_v58 = vpack.c.bf16 %v625_v22, %v624_v57 }
 0x21b   :  { %811 = vst [vmem:[#allocation8 + $0x38] sm:$0xff] %v803_v58  }
 0x21c   :  { %1053 = shalt.err (!%p1050_p6)
}
 0x21d   :  { %s1054_s12 = scalar_lea.hbm %s1340_s5, 1024 }
 0x21e   :  { %p1055_p7 = scmp.ne.s32.totalorder %s1340_s5, %s1054_s12  ;;  %p1058_p8 = scmp.lt.u32.totalorder %s1054_s12, %s1340_s5 }
 0x220   :  { %p1060_p9 = pnand %p1058_p8, %p1055_p7 }
 0x222   :  { %1063 = shalt.err (!%p1060_p9)
}
 0x223   :  { %717 = dma.vmem_to_hbm [thread:$0]  %s712_s8, 1024, %s1340_s5, [#allocation5], %s1074_s0, %s1074_s0, %s1075_s17  }
 0x224   :  { %1068 = dma.done.wait [#allocation5], 1024  }
 0x225   :  { %1069 = vsyncadd [#allocation5], 4294966272 }
 0x226   :  { %721 = vsyncpa [#allocation4], 1 }
 0x227   :  { %722 = vsyncpa [#allocation7], 1 }
 0x228   :  { %723 = vsyncpa [#allocation5], 1 }

</bundles_post_ra>
